<compile_context>
chip_gen: v7x
topology: tpu7x:2x2x1
jax: 0.10.0
libtpu: 0.0.40
codegen_flags: <defaults>
</compile_context>

<pallas_src>
import functools

import jax
import jax.numpy as jnp
from jax import lax
from jax.experimental import pallas as pl
from jax.experimental.pallas import tpu as pltpu


def _round_up(n: int, m: int) -> int:
    return ((n + m - 1) // m) * m


def _cdiv(a: int, b: int) -> int:
    return -(-a // b)


def _pick_divisor_tile(total: int, target: int, align: int):
    """Largest t <= target with t % align == 0 and total % t == 0, else None."""
    t = (min(target, total) // align) * align
    while t >= align:
        if total % t == 0:
            return t
        t -= align
    return None


def _tpu_generation_config():
    """Returns (mxu_align, tm_target, th_target, vmem_limit_bytes)."""
    vmem_cap = 128 << 20
    try:
        vmem_cap = int(pltpu.get_tpu_info().vmem_capacity_bytes)
    except Exception:
        pass
    kind = ""
    try:
        kind = (jax.devices()[0].device_kind or "").lower()
    except Exception:
        pass
    is_v5e = ("v5 lite" in kind) or ("v5e" in kind) or ("v5lite" in kind)
    small_vmem = vmem_cap <= (96 << 20)  # v7x-class part (64 MiB per TC)

    mxu_align = 128 if is_v5e else 256
    if small_vmem:
        # v7x: high HBM BW, small VMEM -> modest tiles, tight scoped limit.
        tm_target, th_target = 512, 256
        vmem_limit = min(int(vmem_cap * 7 // 8), 56 << 20)
    elif is_v5e:
        # v5e knee ~240 FLOPs/byte -> tm=512 gives real margin.
        tm_target, th_target = 512, 512
        vmem_limit = min(int(vmem_cap * 7 // 8), 104 << 20)
    else:
        # v6e (or unknown 128-MiB part): knee ~640-720 FLOPs/byte -> tm=1024.
        tm_target, th_target = 1024, 512
        vmem_limit = min(int(vmem_cap * 7 // 8), 104 << 20)
    return mxu_align, tm_target, th_target, vmem_limit


def _choose_token_tile(M: int, target: int):
    """Token tile near M/ceil(M/target); keep >=2 tiles for megacore sharding."""
    n = max(1, _cdiv(M, target))
    if n == 1 and M >= 16:
        n = 2  # ensure the "parallel" axis has >=2 programs (v7x 2 TCs)
    tm = _round_up(_cdiv(M, n), 8)
    return tm, tm * n, n


def _choose_hidden_tile(hidden: int, target: int, align: int):
    """Returns (th_eff, hidden_padded)."""
    if hidden <= target:
        return hidden, hidden  # full block == full array dim: always legal
    t = _pick_divisor_tile(hidden, target, align)
    if t is not None:
        return t, hidden
    # No aligned divisor: pad hidden (zero rows/cols contribute nothing).
    th = max(align, (target // align) * align)
    return th, _round_up(hidden, th)


def _vmem_estimate(tm: int, th: int, dim: int, isz: int) -> int:
    return (
        2 * tm * dim * isz        # x block (double-buffered)
        + 2 * tm * dim * isz      # out block
        + 2 * 2 * th * dim * isz  # wh + wg blocks
        + 2 * dim * th * isz      # wd block
        + tm * dim * 4            # f32 accumulator scratch
        + 3 * tm * th * 4         # h, g, gated intermediates
    )


def _ffn_kernel(x_ref, wh_ref, wg_ref, wd_ref, o_ref, acc_ref, *, compute_dtype):
    # x_ref:  (tm, dim)   token tile
    # wh_ref: (th, dim)   to_hidden weight tile      (PyTorch layout)
    # wg_ref: (th, dim)   to_hidden_gate weight tile
    # wd_ref: (dim, th)   to_dim weight tile
    # o_ref:  (tm, dim)   output tile (resident across the k axis)
    # acc_ref:(tm, dim)   f32 accumulator scratch
    k = pl.program_id(1)

    @pl.when(k == 0)
    def _():
        acc_ref[...] = jnp.zeros_like(acc_ref)

    x = x_ref[...].astype(compute_dtype)
    wh = wh_ref[...].astype(compute_dtype)
    wg = wg_ref[...].astype(compute_dtype)
    wd = wd_ref[...].astype(compute_dtype)

    # NT contraction: contract axis 1 of both operands (no HBM transpose).
    dn = (((1,), (1,)), ((), ()))
    h = lax.dot_general(x, wh, dn, preferred_element_type=jnp.float32)
    g = lax.dot_general(x, wg, dn, preferred_element_type=jnp.float32)
    # SwiGLU gate (VPU + EUP): h * g * sigmoid(g)
    gated = (h * (g * jax.nn.sigmoid(g))).astype(compute_dtype)
    # Partial down-projection over this hidden slice, accumulated in f32.
    acc_ref[...] += lax.dot_general(gated, wd, dn,
                                    preferred_element_type=jnp.float32)

    @pl.when(k == pl.num_programs(1) - 1)
    def _():
        o_ref[...] = acc_ref[...].astype(o_ref.dtype)


def feed_forward(x, w_hidden, w_gate, w_dim, *, tm=None, th=None,
                 compute_dtype=None):
    """SwiGLU feed-forward matching the PyTorch FeedForward module.

    Args:
      x:        (..., dim) input.
      w_hidden: (hidden, dim)  -- nn.Linear(dim, hidden, bias=False).weight
      w_gate:   (hidden, dim)
      w_dim:    (dim, hidden)  -- nn.Linear(hidden, dim, bias=False).weight
      tm, th:   optional tile overrides (default: generation-aware).
      compute_dtype: optional MXU dtype (default: x.dtype).
    """
    orig_shape = x.shape
    dim = orig_shape[-1]
    hidden, dim_w = w_hidden.shape
    assert dim_w == dim and w_gate.shape == (hidden, dim) and w_dim.shape == (dim, hidden)

    mxu_align, tm_target, th_target, vmem_limit = _tpu_generation_config()
    if tm is not None:
        tm_target = tm
    if th is not None:
        th_target = th
    if compute_dtype is None:
        compute_dtype = x.dtype

    x2d = x.reshape(-1, dim)
    M = x2d.shape[0]
    isz = x2d.dtype.itemsize

    th_eff, hidden_pad = _choose_hidden_tile(hidden, th_target, mxu_align)
    tm_eff, M_pad, n_i = _choose_token_tile(M, tm_target)

    # Fit the working set under the scoped-VMEM budget: shrink tm, then th.
    budget = int(vmem_limit * 0.9)
    while _vmem_estimate(tm_eff, th_eff, dim, isz) > budget and tm_eff > 256:
        tm_target = max(256, tm_target // 2)
        tm_eff, M_pad, n_i = _choose_token_tile(M, tm_target)
    while _vmem_estimate(tm_eff, th_eff, dim, isz) > budget and th_eff > mxu_align:
        th_target = max(mxu_align, th_eff // 2)
        th_eff, hidden_pad = _choose_hidden_tile(hidden, th_target, mxu_align)

    nk = hidden_pad // th_eff
    grid = (n_i, nk)

    if M_pad != M:
        x2d = jnp.pad(x2d, ((0, M_pad - M), (0, 0)))
    if hidden_pad != hidden:
        # Zero rows/cols contribute nothing to the accumulation.
        # (In production, pad weights once at parameter-prep time.)
        pad = hidden_pad - hidden
        w_hidden = jnp.pad(w_hidden, ((0, pad), (0, 0)))
        w_gate = jnp.pad(w_gate, ((0, pad), (0, 0)))
        w_dim = jnp.pad(w_dim, ((0, 0), (0, pad)))

    # Weights are streamed once per token tile; activations once.
    cost = pl.CostEstimate(
        flops=6 * M_pad * dim * hidden_pad,
        transcendentals=M_pad * hidden_pad,
        bytes_accessed=int(n_i * 3 * dim * hidden_pad * isz
                           + 2 * M_pad * dim * isz),
    )

    kernel = functools.partial(_ffn_kernel, compute_dtype=compute_dtype)

    out2d = pl.pallas_call(
        kernel,
        out_shape=jax.ShapeDtypeStruct((M_pad, dim), x.dtype),
        grid_spec=pltpu.PrefetchScalarGridSpec(
            num_scalar_prefetch=0,
            grid=grid,
            in_specs=[
                pl.BlockSpec((tm_eff, dim), lambda i, k: (i, 0)),   # x
                pl.BlockSpec((th_eff, dim), lambda i, k: (k, 0)),   # w_hidden
                pl.BlockSpec((th_eff, dim), lambda i, k: (k, 0)),   # w_gate
                pl.BlockSpec((dim, th_eff), lambda i, k: (0, k)),   # w_dim
            ],
            out_specs=pl.BlockSpec((tm_eff, dim), lambda i, k: (i, 0)),
            scratch_shapes=[pltpu.VMEM((tm_eff, dim), jnp.float32)],
        ),
        compiler_params=pltpu.CompilerParams(
            dimension_semantics=("parallel", "arbitrary"),
            vmem_limit_bytes=int(vmem_limit),
        ),
        cost_estimate=cost,
    )(x2d, w_hidden, w_gate, w_dim)

    if M_pad != M:
        out2d = out2d[:M]
    return out2d.reshape(orig_shape)


def _reference(x, w_hidden, w_gate, w_dim):
    h = x @ w_hidden.T
    g = x @ w_gate.T
    return (h * jax.nn.silu(g)) @ w_dim.T


if __name__ == "__main__":
    # ---- Small f32 test (block == full-array path) ----
    batch, seq, dim, hidden = 2, 8, 32, 64
    key = jax.random.PRNGKey(0)
    kx, kh, kg, kd = jax.random.split(key, 4)

    x = jax.random.normal(kx, (batch, seq, dim), dtype=jnp.float32)
    # Shapes follow nn.Linear(..., bias=False).weight.
    w_hidden = jax.random.normal(kh, (hidden, dim), dtype=jnp.float32) * 0.05
    w_gate = jax.random.normal(kg, (hidden, dim), dtype=jnp.float32) * 0.05
    w_dim = jax.random.normal(kd, (dim, hidden), dtype=jnp.float32) * 0.05

    out = feed_forward(x, w_hidden, w_gate, w_dim)
    out = jax.block_until_ready(out)
    ref = _reference(x, w_hidden, w_gate, w_dim)
    assert out.shape == (batch, seq, dim)
    assert jnp.allclose(out, ref, atol=1e-4, rtol=1e-4), "f32 mismatch vs reference"

    # ---- Larger bf16 test (tiled / padded path: multiple token tiles,
    #      padded M, padded hidden, multi-step reduction axis) ----
    b2, s2, d2, h2 = 2, 200, 256, 640
    k2 = jax.random.PRNGKey(1)
    kx2, kh2, kg2, kd2 = jax.random.split(k2, 4)
    x2 = jax.random.normal(kx2, (b2, s2, d2), dtype=jnp.bfloat16)
    wh2 = (jax.random.normal(kh2, (h2, d2), dtype=jnp.float32) * 0.05).astype(jnp.bfloat16)
    wg2 = (jax.random.normal(kg2, (h2, d2), dtype=jnp.float32) * 0.05).astype(jnp.bfloat16)
    wd2 = (jax.random.normal(kd2, (d2, h2), dtype=jnp.float32) * 0.05).astype(jnp.bfloat16)

    out2 = feed_forward(x2, wh2, wg2, wd2, tm=128, th=256)  # force tiling
    out2 = jax.block_until_ready(out2)
    ref2 = _reference(x2.astype(jnp.float32), wh2.astype(jnp.float32),
                      wg2.astype(jnp.float32), wd2.astype(jnp.float32))
    assert out2.shape == (b2, s2, d2)
    assert jnp.allclose(out2.astype(jnp.float32), ref2, atol=5e-2, rtol=5e-2), \
        "bf16 tiled mismatch vs reference"

    print("KERNEL_OK")
</pallas_src>

<mosaic_0001>
module attributes {stable_mosaic.version = 11 : i64} {
  func.func @_ffn_kernel(%arg0: i32, %arg1: i32, %arg2: memref<8x32xf32, #tpu.memory_space<vmem>>, %arg3: memref<64x32xf32, #tpu.memory_space<vmem>>, %arg4: memref<64x32xf32, #tpu.memory_space<vmem>>, %arg5: memref<32x64xf32, #tpu.memory_space<vmem>>, %arg6: memref<8x32xf32, #tpu.memory_space<vmem>>, %arg7: memref<8x32xf32, #tpu.memory_space<vmem>>) attributes {dimension_semantics = [#tpu.dimension_semantics<parallel>, #tpu.dimension_semantics<arbitrary>], iteration_bounds = array<i64: 2, 1>, scalar_prefetch = 0 : i64, scratch_operands = 1 : i64, tpu.core_type = #tpu.core_type<tc>, window_params = [{transform_indices = @transform_0, window_bounds = array<i64: 8, 32>}, {transform_indices = @transform_1, window_bounds = array<i64: 64, 32>}, {transform_indices = @transform_2, window_bounds = array<i64: 64, 32>}, {transform_indices = @transform_3, window_bounds = array<i64: 32, 64>}, {transform_indices = @transform_4, window_bounds = array<i64: 8, 32>}]} {
    %c0_i32 = arith.constant 0 : i32
    %0 = arith.cmpi eq, %arg1, %c0_i32 : i32
    %1 = arith.extui %0 : i1 to i32
    %c0_i32_0 = arith.constant 0 : i32
    %2 = arith.cmpi ne, %1, %c0_i32_0 : i32
    scf.if %2 {
      %cst_17 = arith.constant 0.000000e+00 : f32
      %23 = vector.broadcast %cst_17 : f32 to vector<8x32xf32>
      %c0_18 = arith.constant 0 : index
      %c0_19 = arith.constant 0 : index
      %24 = vector.load %arg7[%c0_18, %c0_19] : memref<8x32xf32, #tpu.memory_space<vmem>>, vector<8x32xf32>
      tpu.vector_store %arg7[%c0_18, %c0_19], %23 {strides = array<i32>} : memref<8x32xf32, #tpu.memory_space<vmem>>, vector<8x32xf32>,
    } else {
    }
    %c0 = arith.constant 0 : index
    %c0_1 = arith.constant 0 : index
    %3 = vector.load %arg2[%c0, %c0_1] : memref<8x32xf32, #tpu.memory_space<vmem>>, vector<8x32xf32>
    %c0_2 = arith.constant 0 : index
    %c0_3 = arith.constant 0 : index
    %4 = vector.load %arg3[%c0_2, %c0_3] : memref<64x32xf32, #tpu.memory_space<vmem>>, vector<64x32xf32>
    %c0_4 = arith.constant 0 : index
    %c0_5 = arith.constant 0 : index
    %5 = vector.load %arg4[%c0_4, %c0_5] : memref<64x32xf32, #tpu.memory_space<vmem>>, vector<64x32xf32>
    %c0_6 = arith.constant 0 : index
    %c0_7 = arith.constant 0 : index
    %6 = vector.load %arg5[%c0_6, %c0_7] : memref<32x64xf32, #tpu.memory_space<vmem>>, vector<32x64xf32>
    %cst = arith.constant dense<0.000000e+00> : vector<8x64xf32>
    %7 = tpu.matmul %3, %4, %cst {dimension_numbers = #tpu.dot_dimension_numbers<[1], [1], [0], [0], [0, 0, 1, 0], [], []>} : vector<8x32xf32>, vector<64x32xf32>, vector<8x64xf32> -> vector<8x64xf32>
    %cst_8 = arith.constant dense<0.000000e+00> : vector<8x64xf32>
    %8 = tpu.matmul %3, %5, %cst_8 {dimension_numbers = #tpu.dot_dimension_numbers<[1], [1], [0], [0], [0, 0, 1, 0], [], []>} : vector<8x32xf32>, vector<64x32xf32>, vector<8x64xf32> -> vector<8x64xf32>
    %9 = arith.negf %8 : vector<8x64xf32>
    %10 = math.exp %9 : vector<8x64xf32>
    %cst_9 = arith.constant 1.000000e+00 : f32
    %11 = vector.broadcast %cst_9 : f32 to vector<8x64xf32>
    %12 = arith.addf %11, %10 : vector<8x64xf32>
    %13 = arith.divf %11, %12 : vector<8x64xf32>
    %14 = arith.mulf %8, %13 : vector<8x64xf32>
    %15 = arith.mulf %7, %14 : vector<8x64xf32>
    %c0_10 = arith.constant 0 : index
    %c0_11 = arith.constant 0 : index
    %16 = vector.load %arg7[%c0_10, %c0_11] : memref<8x32xf32, #tpu.memory_space<vmem>>, vector<8x32xf32>
    %cst_12 = arith.constant dense<0.000000e+00> : vector<8x32xf32>
    %17 = tpu.matmul %15, %6, %cst_12 {dimension_numbers = #tpu.dot_dimension_numbers<[1], [1], [0], [0], [0, 0, 1, 0], [], []>} : vector<8x64xf32>, vector<32x64xf32>, vector<8x32xf32> -> vector<8x32xf32>
    %18 = arith.addf %16, %17 : vector<8x32xf32>
    %c0_13 = arith.constant 0 : index
    %c0_14 = arith.constant 0 : index
    %19 = vector.load %arg7[%c0_13, %c0_14] : memref<8x32xf32, #tpu.memory_space<vmem>>, vector<8x32xf32>
    tpu.vector_store %arg7[%c0_13, %c0_14], %18 {strides = array<i32>} : memref<8x32xf32, #tpu.memory_space<vmem>>, vector<8x32xf32>,
    %c0_i32_15 = arith.constant 0 : i32
    %20 = arith.cmpi eq, %arg1, %c0_i32_15 : i32
    %21 = arith.extui %20 : i1 to i32
    %c0_i32_16 = arith.constant 0 : i32
    %22 = arith.cmpi ne, %21, %c0_i32_16 : i32
    scf.if %22 {
      %c0_17 = arith.constant 0 : index
      %c0_18 = arith.constant 0 : index
      %23 = vector.load %arg7[%c0_17, %c0_18] : memref<8x32xf32, #tpu.memory_space<vmem>>, vector<8x32xf32>
      %c0_19 = arith.constant 0 : index
      %c0_20 = arith.constant 0 : index
      %24 = vector.load %arg6[%c0_19, %c0_20] : memref<8x32xf32, #tpu.memory_space<vmem>>, vector<8x32xf32>
      tpu.vector_store %arg6[%c0_19, %c0_20], %23 {strides = array<i32>} : memref<8x32xf32, #tpu.memory_space<vmem>>, vector<8x32xf32>,
    } else {
    }
    return
  }
  func.func @transform_0(%arg0: i32, %arg1: i32) -> (i32, i32) {
    %c0_i32 = arith.constant 0 : i32
    %c0_i32_0 = arith.constant 0 : i32
    return %arg0, %c0_i32 : i32, i32
  }
  func.func @transform_1(%arg0: i32, %arg1: i32) -> (i32, i32) {
    %c0_i32 = arith.constant 0 : i32
    %c0_i32_0 = arith.constant 0 : i32
    return %arg1, %c0_i32 : i32, i32
  }
  func.func @transform_2(%arg0: i32, %arg1: i32) -> (i32, i32) {
    %c0_i32 = arith.constant 0 : i32
    %c0_i32_0 = arith.constant 0 : i32
    return %arg1, %c0_i32 : i32, i32
  }
  func.func @transform_3(%arg0: i32, %arg1: i32) -> (i32, i32) {
    %c0_i32 = arith.constant 0 : i32
    %c0_i32_0 = arith.constant 0 : i32
    return %c0_i32, %arg1 : i32, i32
  }
  func.func @transform_4(%arg0: i32, %arg1: i32) -> (i32, i32) {
    %c0_i32 = arith.constant 0 : i32
    %c0_i32_0 = arith.constant 0 : i32
    return %arg0, %c0_i32 : i32, i32
  }
}

</mosaic_0001>

<bundles_post_ra>
// kernel: tpu_custom_call.1
= control target key start
LH: loop header
LB: loop body
LE: loop exit
PB: predicated region body
PF: predicated region fallthrough
CT: control target
= control target key end

     0   :  { %9 = vsyncpa [#allocation4], 0  ;;  %s1564_s0 = inlined_call_operand.hbm [shape: f32[16,32], index: 0, kind: input, shape index: {}]   ;;  %s1565_s1 = inlined_call_operand.hbm [shape: f32[64,32], index: 1, kind: input, shape index: {}]   ;;  %s1566_s2 = inlined_call_operand.hbm [shape: f32[64,32], index: 2, kind: input, shape index: {}]   ;;  %s1567_s3 = inlined_call_operand.hbm [shape: f32[32,64], index: 3, kind: input, shape index: {}]   ;;  %s1568_s4 = inlined_call_operand.hbm [shape: f32[16,32], index: 4, kind: output, shape index: {}]  }
   0x1   :  { %11 = vsyncpa [#allocation4 + $0x1], 0 }
   0x2   :  { %12 = vsyncpa [#allocation7], 0 }
   0x3   :  { %13 = vsyncpa [#allocation10], 0 }
   0x4   :  { %14 = vsyncpa [#allocation5], 0 }
   0x5   :  { %16 = vsyncpa [#allocation5 + $0x1], 0  ;;  %s1240_s15 = smov 0   ;;  %s1242_s16 = smov 0  }
   0x6   :  { %s1244_s17 = smov 0   ;;  %s1246_s18 = smov 0  }
   0x7   :  { %s1248_s19 = smov 0   ;;  %s1250_s20 = smov 0  }
   0x8 LB: > { %s742_s21 = sadd.s32 4294967295, %s1203_s20   ;;  %s743_s22 = sadd.s32 4294967294, %s1203_s20   ;;  %s1203_s20 = sphi %s1250_s20, %s22_s20   ;;  %s1199_s19 = sphi %s1248_s19, %s1597_s19   ;;  %s1195_s18 = sphi %s1246_s18, %s1596_s18   ;;  %s1191_s17 = sphi %s1244_s17, %s1595_s17   ;;  %s1187_s16 = sphi %s1242_s16, %s1594_s16   ;;  %s1183_s15 = sphi %s1240_s15, %s1593_s15  }
   0x9   : > { %p54_p0 = scmp.ne.s32.totalorder %s1187_s16, %s1183_s15  ;;  %p1274_p1 = scmp.eq.s32.totalorder %s742_s21, 0 }
   0xa   : > { %p1278_p2 = scmp.eq.s32.totalorder %s742_s21, 1  ;;  %p162_p3 = scmp.eq.s32.totalorder %s743_s22, 1 }
   0xb   : > { %s1574_s23 = scalar_select %p1274_p1, 1, 0 }
   0xc   : > { %s1575_s24 = scalar_select %p1278_p2, 1, 0 }
   0xd   : > { %p1284_p4 = por %p1274_p1, %p54_p0  ;;  %p744_p5 = scmp.ge.s32.totalorder %s1203_s20, 1 }
   0xe   : > { %p1289_p6 = por %p162_p3, %p54_p0  ;;  %p169_p7 = scmp.lt.s32.totalorder %s1203_s20, 3 }
   0xf   : > { %s1576_s25 = scalar_select %p1284_p4, 1, 0 }
  0x10   : > { %s1577_s26 = scalar_select %p1289_p6, 1, 0 }
  0x11   : > { %p1294_p8 = pnand %p744_p5, %p169_p7  ;;  %s1205_s28 = smov [#allocation6]  }
  0x12   : > { %1578 = sst [smem:[#allocation16_spill]] %s1577_s26  ;;  %s184_s29 = sshll.u32 %s1205_s28, 4  ;;  %s1298_s29 = int_to_ptr.vmem [resolvable:$true] %s184_s29 }
  0x13   : > { %s1579_s27 = scalar_select %p1294_p8, 1, 0 }
  0x14   : > { %p913_p9 = pneg %p1294_p8  ;;  %s1206_s5 = smov [#allocation8]  }
  0x15   : > { %s200_s6 = sshll.u32 %s1206_s5, 4  ;;  %s1207_s7 = smov [#allocation9]   ;;  %s1309_s6 = int_to_ptr.vmem [resolvable:$true] %s200_s6 }
  0x16   : > { %p1305_p11 = pnand %p913_p9, %p1274_p1  ;;  %s1311_s8 = sshll.u32 %s1207_s7, 4  ;;  %s216_s8 = int_to_ptr.vmem [resolvable:$true] %s1311_s8 }
  0x17   : > { %s999_s11 = scalar_lea.hbm %s1565_s1, 1024 }
  0x18   : > { %p1000_p12 = scmp.ne.s32.totalorder %s1565_s1, %s999_s11  ;;  %p1321_p13 = pneg %p1305_p11 }
  0x19   : > { %p1006_p5 = scmp.lt.u32.totalorder %s999_s11, %s1565_s1 }
  0x1a   : > { %p1002_p0 = pnand %p1321_p13, %p1000_p12 }
  0x1c   : > { %p1003_p3 = pneg %p1002_p0 }
  0x1e   : > { %p1008_p7 = pnand %p1006_p5, %p1003_p3 }
  0x20   : > { %1011 = shalt.err (!%p1008_p7)
}
  0x21   : > { %s1012_s28 = scalar_lea.vmem %s1298_s29, 1024  ;;  %p1020_p1 = scmp.lt.s32.totalorder %s1298_s29, %s1298_s29 }
  0x22   : > { %p1013_p9 = scmp.ne.s32.totalorder %s1298_s29, %s1012_s28  ;;  %p1021_p4 = scmp.lt.s32.totalorder %s1012_s28, %s1012_s28 }
  0x24   : > { %p1015_p10 = pnand %p1013_p9, %p1321_p13  ;;  %p1022_p12 = por %p1021_p4, %p1020_p1 }
  0x26   : > { %p1016_p6 = pneg %p1015_p10 }
  0x28   : > { %p1023_p0 = pnand %p1022_p12, %p1016_p6 }
  0x2a   : > { %1026 = shalt.err (!%p1023_p0)
}
  0x2b   : > { %s1208_s5 = smov 128   ;;  %s1209_s7 = smov 8  }
  0x2c   : > { %916 = dma.hbm_to_vmem [thread:$0]  (!%p1305_p11), %s1565_s1, 1024, %s1298_s29, [#allocation7], %s1208_s5, %s1208_s5, %s1209_s7  }
  0x2d   : > { %s1027_s13 = scalar_lea.hbm %s1566_s2, 1024 }
  0x2e   : > { %p1028_p1 = scmp.ne.s32.totalorder %s1566_s2, %s1027_s13  ;;  %p1034_p10 = scmp.lt.u32.totalorder %s1027_s13, %s1566_s2 }
  0x30   : > { %p1030_p4 = pnand %p1028_p1, %p1321_p13 }
  0x32   : > { %p1031_p6 = pneg %p1030_p4 }
  0x34   : > { %p1036_p3 = pnand %p1034_p10, %p1031_p6 }
  0x36   : > { %1039 = shalt.err (!%p1036_p3)
}
  0x37   : > { %s1040_s29 = scalar_lea.vmem %s1309_s6, 1024  ;;  %p1048_p12 = scmp.lt.s32.totalorder %s1309_s6, %s1309_s6 }
  0x38   : > { %p1041_p5 = scmp.ne.s32.totalorder %s1309_s6, %s1040_s29  ;;  %p1049_p0 = scmp.lt.s32.totalorder %s1040_s29, %s1040_s29 }
  0x3a   : > { %p1043_p7 = pnand %p1041_p5, %p1321_p13  ;;  %p1050_p1 = por %p1049_p0, %p1048_p12 }
  0x3c   : > { %p1044_p9 = pneg %p1043_p7 }
  0x3e   : > { %p1051_p4 = pnand %p1050_p1, %p1044_p9 }
  0x40   : > { %1054 = shalt.err (!%p1051_p4)
}
  0x41   : > { %919 = dma.hbm_to_vmem [thread:$0]  (!%p1305_p11), %s1566_s2, 1024, %s1309_s6, [#allocation7], %s1208_s5, %s1208_s5, %s1209_s7  }
  0x42   : > { %s1055_s12 = scalar_lea.hbm %s1567_s3, 512 }
  0x43   : > { %p1056_p6 = scmp.ne.s32.totalorder %s1567_s3, %s1055_s12  ;;  %p1062_p5 = scmp.lt.u32.totalorder %s1055_s12, %s1567_s3 }
  0x45   : > { %p1058_p10 = pnand %p1056_p6, %p1321_p13 }
  0x47   : > { %p1059_p3 = pneg %p1058_p10 }
  0x49   : > { %p1064_p7 = pnand %p1062_p5, %p1059_p3 }
  0x4b   : > { %1067 = shalt.err (!%p1064_p7)
}
  0x4c   : > { %s1068_s29 = scalar_lea.vmem %s216_s8, 512  ;;  %p1076_p1 = scmp.lt.s32.totalorder %s216_s8, %s216_s8 }
  0x4d   : > { %p1069_p9 = scmp.ne.s32.totalorder %s216_s8, %s1068_s29  ;;  %p1077_p4 = scmp.lt.s32.totalorder %s1068_s29, %s1068_s29 }
  0x4f   : > { %p1071_p12 = pnand %p1069_p9, %p1321_p13  ;;  %p1078_p8 = por %p1077_p4, %p1076_p1 }
  0x51   : > { %p1072_p0 = pneg %p1071_p12 }
  0x53   : > { %p1079_p2 = pnand %p1078_p8, %p1072_p0 }
  0x55   : > { %1082 = shalt.err (!%p1079_p2)
}
  0x56   : > { %922 = dma.hbm_to_vmem [thread:$0]  (!%p1305_p11), %s1567_s3, 512, %s216_s8, [#allocation10], %s1208_s5, %s1208_s5, %s1209_s7  }
  0x57   : > { %s41_s14 = sadd.s32 1, %s1191_s17  ;;  %s34_s30 = sadd.s32 1, %s1199_s19 }
  0x58   : > { %p48_p2 = scmp.ne.s32.totalorder %s1191_s17, %s1187_s16  ;;  %p36_p8 = scmp.ge.s32.totalorder %s34_s30, 2 }
  0x59   : > { %p49_p13 = scmp.eq.s32.totalorder %s1203_s20, 0  ;;  %p1582_p6 = scmp.ne.s32.totalorder %s1575_s24, 0 }
  0x5a   : > { %p934_p3 = scmp.lt.s32.totalorder %s1203_s20, 2  ;;  %s1599_s30 = smov (%p36_p8, %s34_s30), 0 }
  0x5b   : > { %p1400_p10 = por %p1582_p6, %p48_p2  ;;  %p50_p5 = por %p49_p13, %p48_p2 }
  0x5c   : > { %s229_s10 = sand.u32 1, %s1191_s17   ;;  %s38_s11 = ssub.s32 %s1199_s19, %s1599_s30 }
  0x5d   : > { %p39_p7 = scmp.eq.s32.totalorder %s38_s11, 0  ;;  %s749_s8 = sshll.u32 %s229_s10, 3 }
  0x5e   : > { %s750_s5 = sshll.u32 %s1199_s19, 7  ;;  %s233_s21 = scalar_lea.vmem [#allocation3], %s749_s8 }
  0x5f   : > { %s1412_s7 = scalar_select %p39_p7, %s1191_s17, %s41_s14  }
  0x60   : > { %s1417_s24 = scalar_lea.hbm %s1564_s0, %s750_s5  ;;  %s240_s22 = sshll.u32 %s233_s21, 4  ;;  %s1419_s22 = int_to_ptr.vmem [resolvable:$true] %s240_s22 }
  0x61   : > { %p1423_p11 = pnand %p934_p3, %p50_p5  ;;  %s230_s29 = scalar_lea.sflag [#allocation4], %s229_s10 }
  0x62   : > { %s1083_s6 = scalar_lea.hbm %s1417_s24, 128  ;;  %s1088_s11 = scalar_lea.hbm %s1564_s0, 256 }
  0x63   : > { %p1084_p9 = scmp.ne.s32.totalorder %s1417_s24, %s1083_s6  ;;  %p1085_p12 = pneg %p1423_p11 }
  0x64   : > { %p1089_p4 = scmp.lt.u32.totalorder %s1417_s24, %s1564_s0  ;;  %p1090_p2 = scmp.lt.u32.totalorder %s1088_s11, %s1083_s6 }
  0x65   : > { %p1086_p0 = pnand %p1085_p12, %p1084_p9  ;;  %p1092_p13 = scmp.lt.u32.totalorder %s1083_s6, %s1417_s24 }
  0x66   : > { %p1091_p8 = por %p1090_p2, %p1089_p4 }
  0x67   : > { %p1087_p1 = pneg %p1086_p0 }
  0x68   : > { %p1093_p6 = por %p1092_p13, %p1091_p8 }
  0x6a   : > { %p1094_p3 = pnand %p1093_p6, %p1087_p1 }
  0x6c   : > { %1097 = shalt.err (!%p1094_p3)
}
  0x6d   : > { %s1098_s10 = scalar_lea.vmem %s1419_s22, 128  ;;  %s1210_s12 = smov [#allocation3]  }
  0x6e   : > { %p1099_p5 = scmp.ne.s32.totalorder %s1419_s22, %s1098_s10  ;;  %s1103_s13 = sshll.u32 %s1210_s12, 4  ;;  %s1104_s13 = int_to_ptr.vmem [resolvable:$false] %s1103_s13 }
  0x6f   : > { %s1105_s21 = scalar_lea.vmem %s1104_s13, 256  ;;  %p1106_p0 = scmp.lt.s32.totalorder %s1419_s22, %s1104_s13 }
  0x70   : > { %p1101_p7 = pnand %p1099_p5, %p1085_p12  ;;  %p1107_p4 = scmp.lt.s32.totalorder %s1105_s21, %s1098_s10 }
  0x72   : > { %p1102_p9 = pneg %p1101_p7  ;;  %p1108_p2 = por %p1107_p4, %p1106_p0 }
  0x74   : > { %p1109_p8 = pnand %p1108_p2, %p1102_p9 }
  0x76   : > { %1112 = shalt.err (!%p1109_p8)
}
  0x77   : > { %926 = dma.hbm_to_vmem [thread:$0]  (!%p1423_p11), %s1417_s24, 128, %s1419_s22, %s230_s29  }
  0x78   : > { %p1585_p1 = scmp.ne.s32.totalorder %s1579_s27, 0 }
  0x79   : > { %s1455_s6 = sand.u32 (!%p1585_p1), 1, %s1187_s16   ;;  %p1586_p12 = scmp.ne.s32.totalorder (!%p1585_p1), %s1576_s25, 0 }
  0x7a   : > { %249 = sbr.rel (%p1585_p1) target bundleno = 648 (0x288), region = 36  ;;  %s752_s26 = sshll.u32 (!%p1585_p1), %s1455_s6, 3 }
  0x7b   : > { %s252_s14 = scalar_lea.sflag (!%p1585_p1), [#allocation4], %s1455_s6  ;;  %s1461_s11 = scalar_lea.vmem (!%p1585_p1), [#allocation3], %s752_s26 }
  0x81   : > { %1166 = dma.done.wait (%p1586_p12), %s252_s14, 128  }
  0x82   : > { %1168 = vsyncadd (%p1586_p12), %s252_s14, 4294967168  ;;  %p1587_p11 = scmp.ne.s32.totalorder %s1574_s23, 0 }
  0x84   : > { %1170 = dma.done.wait (%p1587_p11), [#allocation7], 2048  }
  0x85   : > { %1172 = vsyncadd (%p1587_p11), [#allocation7], 4294965248 }
  0x86   : > { %1174 = dma.done.wait (%p1587_p11), [#allocation10], 512  }
  0x87   : > { %1176 = vsyncadd (%p1587_p11), [#allocation10], 4294966784  ;;  %vm298_vm0 = vcmask 261120   ;;  %v1211_v0 = vmov 0.0|0.0   ;;  %v1212_v1 = vmov 0.0   ;;  %vm1213_vm1 = vmmov 0  }
  0x88   : > { %873 = vmatprep.subr.bf16.mxu1 %v1211_v0  ;;  %857 = vmatprep.subr.bf16.mxu0 %v1211_v0  ;;  %299 = vst.msk [vmem:[#allocation2] sm:$0xff] %vm298_vm0, %v1212_v1  ;;  %v309_v2 = vld [vmem:[#allocation8] sm:$0xff]  ;;  %v310_v3 = vld [vmem:[#allocation8 + $0x8] sm:$0xff]  ;;  %vm1480_vm2 = vmpackc.low %vm298_vm0, %vm298_vm0  ;;  %vm522_vm3 = vcmask 523264   ;;  %s782_s23 = sshll.u32 %s1195_s18, 7  ;;  %s291_s25 = scalar_lea.vmem [#allocation11], %s752_s26 }
  0x89   : > { %843 = vmatprep.mubr.msk.f32.mxu1 %vm1213_vm1, %v1212_v1  ;;  %824 = vmatprep.mubr.msk.f32.mxu0 %vm1213_vm1, %v1212_v1  ;;  %v874_v5 = vpack.c.bf16 %v310_v3, %v309_v2  ;;  %v301_v6 = vld [vmem:[#allocation6] sm:$0xff]  ;;  %v302_v7 = vld [vmem:[#allocation6 + $0x8] sm:$0xff]  ;;  %v311_v8 = vld [vmem:[#allocation8 + $0x10] sm:$0xff]  ;;  %s629_s27 = sshll.u32 %s291_s25, 4  ;;  %s1514_s28 = scalar_lea.hbm %s1568_s4, %s782_s23  ;;  %s1516_s27 = int_to_ptr.vmem [resolvable:$true] %s629_s27 }
  0x8a   : > { %v312_v9 = vld [vmem:[#allocation8 + $0x18] sm:$0xff]  ;;  %v858_v10 = vpack.c.bf16 %v302_v7, %v301_v6  ;;  %v303_v12 = vld [vmem:[#allocation6 + $0x10] sm:$0xff]  ;;  %v313_v15 = vld [vmem:[#allocation8 + $0x20] sm:$0xff]  ;;  %s616_s29 = scalar_lea.sflag [#allocation5], %s1455_s6  ;;  %s1113_s8 = scalar_lea.vmem %s1516_s27, 128 }
  0x8b   : > { %876 = vmatpush3.bf16.xpose.msk.msra.mxu1 %vm1480_vm2, %v874_v5  ;;  %v878_v11 = vpack.c.bf16 %v312_v9, %v311_v8  ;;  %v304_v13 = vld [vmem:[#allocation6 + $0x18] sm:$0xff]  ;;  %v314_v16 = vld [vmem:[#allocation8 + $0x28] sm:$0xff]  ;;  %v305_v18 = vld [vmem:[#allocation6 + $0x20] sm:$0xff]  ;;  %p1114_p13 = scmp.ne.s32.totalorder %s1516_s27, %s1113_s8  ;;  %s1214_s18 = smov [#allocation11]  }
  0x8c   : > { %877 = vmatprep.subr.bf16.mxu1 %v1211_v0  ;;  %860 = vmatpush3.bf16.xpose.msk.msra.mxu0 %vm1480_vm2, %v858_v10  ;;  %v862_v14 = vpack.c.bf16 %v304_v13, %v303_v12  ;;  %v882_v17 = vpack.c.bf16 %v314_v16, %v313_v15  ;;  %v306_v19 = vld [vmem:[#allocation6 + $0x28] sm:$0xff]  ;;  %v315_v21 = vld [vmem:[#allocation8 + $0x30] sm:$0xff]  ;;  %v316_v22 = vld [vmem:[#allocation8 + $0x38] sm:$0xff]  ;;  %s1117_s5 = sshll.u32 %s1214_s18, 4  ;;  %s1118_s5 = int_to_ptr.vmem [resolvable:$false] %s1117_s5 }
  0x8d   : > { %861 = vmatprep.subr.bf16.mxu0 %v1211_v0  ;;  %v866_v20 = vpack.c.bf16 %v306_v19, %v305_v18  ;;  %v886_v23 = vpack.c.bf16 %v316_v22, %v315_v21  ;;  %v307_v24 = vld [vmem:[#allocation6 + $0x30] sm:$0xff]  ;;  %v308_v25 = vld [vmem:[#allocation6 + $0x38] sm:$0xff]  ;;  %v317_v28 = vld [vmem:[#allocation9] sm:$0xff]  ;;  %p1115_p6 = pnand %p1114_p13, %p1400_p10  ;;  %s1119_s10 = scalar_lea.vmem %s1118_s5, 256 }
  0x8e   : > { %v870_v26 = vpack.c.bf16 %v308_v25, %v307_v24  ;;  %v300_v27 = vld [vmem:[%s1461_s11] sm:$0xff]  ;;  %v318_v29 = vld [vmem:[#allocation9 + $0x8] sm:$0xff]  ;;  %vm891_vm4 = vmpackc.low %vm522_vm3, %vm522_vm3  ;;  %p1120_p5 = scmp.lt.s32.totalorder %s1516_s27, %s1118_s5  ;;  %p1121_p7 = scmp.lt.s32.totalorder %s1119_s10, %s1113_s8 }
  0x8f   : > { %v890_v30 = vpack.c.bf16 %v318_v29, %v317_v28  ;;  %v319_v31 = vld [vmem:[#allocation9 + $0x10] sm:$0xff]  ;;  %v320_v32 = vld [vmem:[#allocation9 + $0x18] sm:$0xff]  ;;  %v521_v44 = vld [vmem:[#allocation2] sm:$0xff]  ;;  %p1116_p3 = pneg %p1115_p6 }
  0x90   : > { %v894_v33 = vpack.c.bf16 %v320_v32, %v319_v31  ;;  %p1122_p9 = por %p1121_p7, %p1120_p5 }
  0x92   : > { %p1123_p0 = pnand %p1122_p9, %p1116_p3 }
  0x93   : > { %880 = vmatpush3.bf16.xpose.msk.msra.mxu1 %vm1480_vm2, %v878_v11 }
  0x94   : > { %881 = vmatprep.subr.bf16.mxu1 %v1211_v0  ;;  %864 = vmatpush3.bf16.xpose.msk.msra.mxu0 %vm1480_vm2, %v862_v14 }
  0x95   : > { %865 = vmatprep.subr.bf16.mxu0 %v1211_v0 }
  0x9b   : > { %884 = vmatpush3.bf16.xpose.msk.msra.mxu1 %vm1480_vm2, %v882_v17 }
  0x9c   : > { %885 = vmatprep.subr.bf16.mxu1 %v1211_v0  ;;  %868 = vmatpush3.bf16.xpose.msk.msra.mxu0 %vm1480_vm2, %v866_v20 }
  0x9d   : > { %869 = vmatprep.subr.bf16.mxu0 %v1211_v0 }
  0xa3   : > { %888 = vmatpush3.bf16.xpose.msk.msra.mxu1 %vm1480_vm2, %v886_v23 }
  0xa4   : > { %872 = vmatpush3.bf16.xpose.msk.msra.mxu0 %vm1480_vm2, %v870_v26 }
  0xa5   : > { %889 = vmatprep.subr.bf16.mxu0 %v1211_v0 }
  0xaa   : > { %844 = vmatmul.mubr.msk.f32.vlgmr.msra.gmra.mrb[0].mxu1 %vm298_vm0, %v300_v27 }
  0xab   : > { %825 = vmatmul.mubr.msk.f32.vlgmr.msra.gmra.mrb[0].mxu0 %vm298_vm0, %v300_v27 }
  0xac   : > { %854 = vmatprep.mubr.msk.f32.mxu0 %vm1213_vm1, %v1212_v1  ;;  %892 = vmatpush3.bf16.xpose.msk.msra.mxu0 %vm891_vm4, %v890_v30 }
  0xad   : > { %893 = vmatprep.subr.bf16.mxu0 %v1211_v0 }
  0xb4   : > { %896 = vmatpush3.bf16.xpose.msk.msra.mxu0 %vm891_vm4, %v894_v33 }
 0x17d   : > { %v509_v34 = vpop.f32.mrb[0].mxu1 }
 0x17e   : > { %v775_v35 = vmul.f32 -1.442695, %v509_v34  ;;  %v845_v36 = vpop.f32.mrb[1].mxu1  ;;  %v415_v37 = vpop.f32.mrb[0].mxu0 }
 0x17f   : > { %v826_v38 = vpop.f32.mrb[1].mxu0 }
 0x180   : > { %995 = vpow2.f32 %v775_v35 }
 0x18a   : > { %v996_v39 = vpop.eup %995 }
 0x18b   : > { %v516_v40 = vadd.f32 1.0, %v996_v39 }
 0x18d   : > { %997 = vrcp.f32 %v516_v40 }
 0x197   : > { %v998_v41 = vpop.eup %997 }
 0x198   : > { %v519_v42 = vmul.f32 %v998_v41, %v509_v34 }
 0x19a   : > { %v520_v43 = vmul.f32 %v519_v42, %v415_v37 }
 0x19c   : > { %855 = vmatmul.mubr.msk.f32.vlgmr.msra.gmra.mrb[2].mxu0 %vm522_vm3, %v520_v43 }
 0x26f   : > { %v604_v45 = vpop.f32.mrb[2].mxu0 }
 0x270   : > { %v608_v46 = vadd.f32 %v604_v45, %v521_v44  ;;  %v856_v47 = vpop.f32.mrb[3].mxu0 }
 0x272   : > { %609 = vst.msk [vmem:[#allocation2] sm:$0xff] %vm298_vm0, %v608_v46 }
 0x279   : > { %v613_v48 = vld [vmem:[#allocation2] sm:$0xff] }
 0x27a   : > { %614 = vst.msk [vmem:[%s291_s25] sm:$0xff] %vm298_vm0, %v613_v48 }
 0x27b   : > { %1126 = shalt.err (!%p1123_p0)
}
 0x27c   : > { %s1127_s12 = scalar_lea.hbm %s1514_s28, 128  ;;  %s1131_s6 = scalar_lea.hbm %s1568_s4, 256 }
 0x27d   : > { %p1128_p4 = scmp.ne.s32.totalorder %s1514_s28, %s1127_s12  ;;  %p1132_p1 = scmp.lt.u32.totalorder %s1514_s28, %s1568_s4 }
 0x27e   : > { %p1133_p12 = scmp.lt.u32.totalorder %s1131_s6, %s1127_s12  ;;  %p1135_p13 = scmp.lt.u32.totalorder %s1127_s12, %s1514_s28 }
 0x27f   : > { %p1129_p2 = pnand %p1128_p4, %p1400_p10 }
 0x280   : > { %p1134_p11 = por %p1133_p12, %p1132_p1 }
 0x281   : > { %p1130_p8 = pneg %p1129_p2 }
 0x282   : > { %p1136_p6 = por %p1135_p13, %p1134_p11 }
 0x284   : > { %p1137_p3 = pnand %p1136_p6, %p1130_p8 }
 0x286   : > { %1140 = shalt.err (!%p1137_p3)
}
 0x287   : > { %911 = dma.vmem_to_hbm [thread:$0]  (%p1400_p10), %s1516_s27, 128, %s1514_s28, %s616_s29  }
 0x288 PF: > { %s1590_s11 = sld [smem:[#allocation16_spill]]  ;;  %s641_s23 = sand.u32 1, %s1183_s15  }
 0x289   : > { %p1592_p7 = scmp.ge.s32.totalorder %s1203_s20, 2  ;;  %s642_s25 = scalar_lea.sflag [#allocation5], %s641_s23 }
 0x28e   : > { %p1591_p5 = scmp.ne.s32.totalorder %s1590_s11, 0 }
 0x290   : > { %p928_p9 = pnand %p1592_p7, %p1591_p5 }
 0x292   : > { %1178 = dma.done.wait (!%p928_p9), %s642_s25, 128  }
 0x293   : > { %1180 = vsyncadd (!%p928_p9), %s642_s25, 4294967168  ;;  %s22_s20 = sadd.s32 1, %s1203_s20   ;;  %s1593_s15 = smov %s1187_s16 }
 0x294   : > { %p19_p0 = scmp.ge.s32.totalorder %s22_s20, 4   ;;  %s1594_s16 = smov %s1191_s17 }
 0x295   : > { %s1595_s17 = smov %s1412_s7  ;;  %s1596_s18 = smov %s1199_s19 }
 0x296   : > { %s1597_s19 = smov %s1599_s30  ;;  %21 = sbr.rel (!%p19_p0) target bundleno = 8 (0x8), region = 104 }
 0x29d   :  { %647 = vsyncpa [#allocation4], 1 }
 0x29e   :  { %649 = vsyncpa [#allocation4 + $0x1], 1 }
 0x29f   :  { %650 = vsyncpa [#allocation7], 1 }
 0x2a0   :  { %651 = vsyncpa [#allocation10], 1 }
 0x2a1   :  { %652 = vsyncpa [#allocation5], 1 }
 0x2a2   :  { %654 = vsyncpa [#allocation5 + $0x1], 1 }

</bundles_post_ra>
